<compile_context>
chip_gen: v6e
topology: v6e:2x2x1
jax: 0.10.0
libtpu: 0.0.40
codegen_flags: <defaults>
</compile_context>

<pallas_src>
import jax
import jax.numpy as jnp
from jax.experimental import pallas as pl
from jax.experimental.pallas import tpu as pltpu

# UER-py's LayerNorm uses eps=1e-6 (custom LayerNorm, not torch.nn.LayerNorm's 1e-5).
LN_EPS = 1e-6


def _word_pos_seg_kernel(src_ids_ref,   # SMEM (B, S) int32      [scalar prefetch]
                         seg_ref,       # VMEM (1, tS, 1) int32
                         pos_ref,       # VMEM (tS, E)
                         segtab_ref,    # VMEM (3, E)
                         gamma_ref,     # VMEM (1, E)
                         beta_ref,      # VMEM (1, E)
                         word_hbm,      # ANY  (V, E)             (stays in HBM)
                         out_ref,       # VMEM (1, tS, E)
                         wrows,         # VMEM scratch (2*tS, E)  word-table dtype
                         sems):         # DMA semaphores (2,)     one per buffer slot
    j = pl.program_id(0)                 # sequence-tile index (outer, megacore-shardable)
    b = pl.program_id(1)                 # batch index (inner, sequential on a core)
    num_b = pl.num_programs(1)
    tS = out_ref.shape[1]
    base = j * tS

    def issue_gather(batch, slot):
        """Issue tS per-row DMAs: word_hbm[ids[batch, base:base+tS]] -> wrows slot."""
        slot_base = slot * tS

        def _issue(i, carry):
            row = src_ids_ref[batch, base + i]
            pltpu.make_async_copy(word_hbm.at[pl.ds(row, 1)],
                                  wrows.at[pl.ds(slot_base + i, 1)],
                                  sems.at[slot]).start()
            return carry

        # Unrolled so several id reads + descriptor pushes share a scheduling window.
        jax.lax.fori_loop(0, tS, _issue, 0, unroll=min(8, tS))

    slot_cur = b & 1
    slot_nxt = 1 - slot_cur

    # Prime the pipeline at the start of every batch sweep of this sequence tile.
    @pl.when(b == 0)
    def _():
        issue_gather(0, 0)

    # Prefetch the next batch's word rows while we work on the current one.
    @pl.when(b + 1 < num_b)
    def _():
        issue_gather(b + 1, slot_nxt)

    # ---- overlap: segment select + position partial sum while DMAs land -------
    seg = seg_ref[0]                                            # (tS, 1) int32
    seg_emb = jnp.where(seg == 0, segtab_ref[0:1, :],
              jnp.where(seg == 1, segtab_ref[1:2, :],
                                  segtab_ref[2:3, :]))          # (tS, E)
    partial = pos_ref[...].astype(jnp.float32) + seg_emb.astype(jnp.float32)

    # ---- single byte-count wait for this step's tS gathered rows --------------
    # All tS row copies signaled sems[slot_cur]; one (tS, E)-sized descriptor
    # wait drains exactly that many bytes.
    off = slot_cur * tS
    if tS % 8 == 0:
        off = pl.multiple_of(off, 8)
    pltpu.make_async_copy(word_hbm.at[pl.ds(0, tS)],
                          wrows.at[pl.ds(off, tS)],
                          sems.at[slot_cur]).wait()
    word_emb = wrows[pl.ds(off, tS), :].astype(jnp.float32)     # (tS, E) f32

    # ---- word + position + segment, LayerNorm (f32, eps=1e-6) -----------------
    emb = word_emb + partial
    mean = jnp.mean(emb, axis=-1, keepdims=True)
    var = jnp.mean(jnp.square(emb - mean), axis=-1, keepdims=True)
    norm = (emb - mean) * jax.lax.rsqrt(var + LN_EPS)
    out = (gamma_ref[...].astype(jnp.float32) * norm
           + beta_ref[...].astype(jnp.float32))                 # (tS, E)

    # Dropout is identity at inference time.
    # TODO(synk): training-mode dropout would need pltpu.prng_seed /
    #             pltpu.prng_random_bits to build the keep-mask in-kernel.
    out_ref[0] = out.astype(out_ref.dtype)


def word_pos_seg_embedding(src, seg, params, *, tile_s=256):
    """src, seg: (B, S) int ids.  Returns (B, S, E) in the word table's dtype."""
    B, S = src.shape
    word_table = params["word"]                                # (V, E), native dtype
    V, E = word_table.shape
    max_len = params["pos"].shape[0]
    assert S <= max_len, f"sequence length {S} exceeds position table {max_len}"

    # Sequence tile: up to `tile_s` tokens per grid step.
    tS = min(tile_s, S)
    assert S % tS == 0, "S must be a multiple of the sequence tile"
    assert (tS % 8 == 0) or (tS == S), "tile must be a multiple of 8 or the full S"
    assert V >= tS, "vocab must be >= the sequence tile (wait-descriptor shape)"

    pos_slice = params["pos"][:S]                              # (S, E)
    seg_table = params["seg"]                                  # (3, E)
    gamma = params["gamma"].reshape(1, E)
    beta = params["beta"].reshape(1, E)

    src_ids = src.astype(jnp.int32)                            # (B, S) → SMEM (prefetch)
    seg3 = seg.astype(jnp.int32).reshape(B, S, 1)              # (B, S, 1) → VMEM tiles

    # Sequence tiles outer (megacore-shardable), batch inner: the position tile's
    # block index depends only on the outer coordinate, so it is DMA'd once per
    # sequence tile, not once per (batch, tile).  The batch axis carries the
    # cross-step gather prefetch and therefore must stay "arbitrary".
    grid = (S // tS, B)

    grid_spec = pltpu.PrefetchScalarGridSpec(
        num_scalar_prefetch=1,                                 # src ids → SMEM
        grid=grid,
        in_specs=[
            pl.BlockSpec((1, tS, 1), lambda j, b, src: (b, j, 0)),   # segment ids
            pl.BlockSpec((tS, E),    lambda j, b, src: (j, 0)),      # position rows
            pl.BlockSpec((3, E),     lambda j, b, src: (0, 0)),      # segment table
            pl.BlockSpec((1, E),     lambda j, b, src: (0, 0)),      # gamma
            pl.BlockSpec((1, E),     lambda j, b, src: (0, 0)),      # beta
            pl.BlockSpec(memory_space=pl.ANY),                       # word table (HBM)
        ],
        out_specs=pl.BlockSpec((1, tS, E), lambda j, b, src: (b, j, 0)),
        scratch_shapes=[
            pltpu.VMEM((2 * tS, E), word_table.dtype),         # double-buffered gather
            pltpu.SemaphoreType.DMA((2,)),                     # one DMA sem per slot
        ],
    )

    itemsize = jnp.dtype(word_table.dtype).itemsize
    cost = pl.CostEstimate(
        flops=10 * B * S * E,                                  # adds + LayerNorm work
        transcendentals=B * S,                                 # rsqrt per token
        bytes_accessed=(B * S * E * itemsize) * 2              # gathered rows + output
                       + S * E * itemsize                      # position rows (once/tile)
                       + (3 + 2) * E * itemsize                # seg table + gamma/beta
                       + 2 * B * S * 4,                        # token / segment ids
    )

    return pl.pallas_call(
        _word_pos_seg_kernel,
        out_shape=jax.ShapeDtypeStruct((B, S, E), word_table.dtype),
        grid_spec=grid_spec,
        compiler_params=pltpu.CompilerParams(
            dimension_semantics=("parallel", "arbitrary")),
        cost_estimate=cost,
    )(src_ids, seg3, pos_slice, seg_table, gamma, beta, word_table)


def _reference(src, seg, params):
    word_emb = params["word"][src]                              # (B, S, E)
    pos_emb = params["pos"][:src.shape[1]][None, :, :]          # (1, S, E)
    seg_emb = params["seg"][seg]                                # (B, S, E)
    emb = word_emb + pos_emb + seg_emb
    mean = emb.mean(-1, keepdims=True)
    var = ((emb - mean) ** 2).mean(-1, keepdims=True)
    return params["gamma"] * (emb - mean) / jnp.sqrt(var + LN_EPS) + params["beta"]


if __name__ == "__main__":
    # Small synthetic shapes consistent with the module: vocab=64, emb=32,
    # batch=2, seq=8, max_length=512, 3 segment types.
    VOCAB, EMB, B, S, MAX_LEN = 64, 32, 2, 8, 512

    key = jax.random.PRNGKey(0)
    k_w, k_p, k_s, k_src, k_seg = jax.random.split(key, 5)

    params = {
        "word": jax.random.normal(k_w, (VOCAB, EMB), jnp.float32) * 0.02,
        "pos": jax.random.normal(k_p, (MAX_LEN, EMB), jnp.float32) * 0.02,
        "seg": jax.random.normal(k_s, (3, EMB), jnp.float32) * 0.02,
        "gamma": jnp.ones((EMB,), jnp.float32),
        "beta": jnp.zeros((EMB,), jnp.float32),
    }

    src = jax.random.randint(k_src, (B, S), 0, VOCAB, dtype=jnp.int32)
    seg = jax.random.randint(k_seg, (B, S), 0, 3, dtype=jnp.int32)

    out = word_pos_seg_embedding(src, seg, params)
    out = jax.block_until_ready(out)

    ref = _reference(src, seg, params)
    assert out.shape == (B, S, EMB) and out.dtype == jnp.float32
    assert jnp.allclose(out, ref, atol=1e-5, rtol=1e-5), "mismatch vs reference"

    print("KERNEL_OK")
</pallas_src>

<mosaic_0001>
module attributes {stable_mosaic.version = 11 : i64} {
  func.func @_word_pos_seg_kernel(%arg0: i32, %arg1: i32, %arg2: memref<2x8xi32, #tpu.memory_space<smem>>, %arg3: memref<1x8x1xi32, #tpu.memory_space<vmem>>, %arg4: memref<8x32xf32, #tpu.memory_space<vmem>>, %arg5: memref<3x32xf32, #tpu.memory_space<vmem>>, %arg6: memref<1x32xf32, #tpu.memory_space<vmem>>, %arg7: memref<1x32xf32, #tpu.memory_space<vmem>>, %arg8: memref<64x32xf32, #tpu.memory_space<any>>, %arg9: memref<1x8x32xf32, #tpu.memory_space<vmem>>, %arg10: memref<16x32xf32, #tpu.memory_space<vmem>>, %arg11: memref<2x!tpu.dma_semaphore, #tpu.memory_space<semaphore_mem>>) attributes {dimension_semantics = [#tpu.dimension_semantics<parallel>, #tpu.dimension_semantics<arbitrary>], iteration_bounds = array<i64: 1, 2>, scalar_prefetch = 1 : i64, scratch_operands = 2 : i64, tpu.core_type = #tpu.core_type<tc>, window_params = [{transform_indices = @transform_0, window_bounds = array<i64: 1, 8, 1>}, {transform_indices = @transform_1, window_bounds = array<i64: 8, 32>}, {pipeline_mode = #tpu.pipeline_mode<synchronous>, transform_indices = @transform_2, window_bounds = array<i64: 3, 32>}, {pipeline_mode = #tpu.pipeline_mode<synchronous>, transform_indices = @transform_3, window_bounds = array<i64: 1, 32>}, {pipeline_mode = #tpu.pipeline_mode<synchronous>, transform_indices = @transform_4, window_bounds = array<i64: 1, 32>}, {}, {transform_indices = @transform_6, window_bounds = array<i64: 1, 8, 32>}]} {
    %c8_i32 = arith.constant 8 : i32
    %0 = arith.muli %arg0, %c8_i32 : i32
    %c1_i32 = arith.constant 1 : i32
    %1 = arith.andi %arg1, %c1_i32 : i32
    %c1_i32_0 = arith.constant 1 : i32
    %2 = arith.subi %c1_i32_0, %1 : i32
    %c0_i32 = arith.constant 0 : i32
    %3 = arith.cmpi eq, %arg1, %c0_i32 : i32
    %4 = arith.extui %3 : i1 to i32
    %c0_i32_1 = arith.constant 0 : i32
    %5 = arith.cmpi ne, %4, %c0_i32_1 : i32
    scf.if %5 {
      %c0_i32_30 = arith.constant 0 : i32
      %69 = arith.addi %0, %c0_i32_30 : i32
      %c0_31 = arith.constant 0 : index
      %70 = arith.index_cast %69 : i32 to index
      %71 = memref.load %arg2[%c0_31, %70] : memref<2x8xi32, #tpu.memory_space<smem>>
      %c0_i32_32 = arith.constant 0 : i32
      %72 = arith.addi %c0_i32_32, %c0_i32_30 : i32
      %c0_i32_33 = arith.constant 0 : i32
      %c0_i32_34 = arith.constant 0 : i32
      %73 = tpu.memref_slice %arg8[%71, %c0_i32_34] : memref<64x32xf32, #tpu.memory_space<any>> -> memref<1x32xf32, #tpu.memory_space<any>>
      %c0_i32_35 = arith.constant 0 : i32
      %74 = tpu.memref_slice %arg10[%72, %c0_i32_35] : memref<16x32xf32, #tpu.memory_space<vmem>> -> memref<1x32xf32, #tpu.memory_space<vmem>>
      %75 = tpu.memref_slice %arg11[%c0_i32_33] : memref<2x!tpu.dma_semaphore, #tpu.memory_space<semaphore_mem>> -> memref<1x!tpu.dma_semaphore, #tpu.memory_space<semaphore_mem>>
      %76 = tpu.memref_squeeze %75 : memref<1x!tpu.dma_semaphore, #tpu.memory_space<semaphore_mem>> -> memref<!tpu.dma_semaphore, #tpu.memory_space<semaphore_mem>>
      tpu.enqueue_dma source(%73 : memref<1x32xf32, #tpu.memory_space<any>>) target(%74 : memref<1x32xf32, #tpu.memory_space<vmem>>) target_semaphore(%76 : memref<!tpu.dma_semaphore, #tpu.memory_space<semaphore_mem>>)
      %c1_i32_36 = arith.constant 1 : i32
      %77 = arith.addi %0, %c1_i32_36 : i32
      %c0_37 = arith.constant 0 : index
      %78 = arith.index_cast %77 : i32 to index
      %79 = memref.load %arg2[%c0_37, %78] : memref<2x8xi32, #tpu.memory_space<smem>>
      %c0_i32_38 = arith.constant 0 : i32
      %80 = arith.addi %c0_i32_38, %c1_i32_36 : i32
      %c0_i32_39 = arith.constant 0 : i32
      %c0_i32_40 = arith.constant 0 : i32
      %81 = tpu.memref_slice %arg8[%79, %c0_i32_40] : memref<64x32xf32, #tpu.memory_space<any>> -> memref<1x32xf32, #tpu.memory_space<any>>
      %c0_i32_41 = arith.constant 0 : i32
      %82 = tpu.memref_slice %arg10[%80, %c0_i32_41] : memref<16x32xf32, #tpu.memory_space<vmem>> -> memref<1x32xf32, #tpu.memory_space<vmem>>
      %83 = tpu.memref_slice %arg11[%c0_i32_39] : memref<2x!tpu.dma_semaphore, #tpu.memory_space<semaphore_mem>> -> memref<1x!tpu.dma_semaphore, #tpu.memory_space<semaphore_mem>>
      %84 = tpu.memref_squeeze %83 : memref<1x!tpu.dma_semaphore, #tpu.memory_space<semaphore_mem>> -> memref<!tpu.dma_semaphore, #tpu.memory_space<semaphore_mem>>
      tpu.enqueue_dma source(%81 : memref<1x32xf32, #tpu.memory_space<any>>) target(%82 : memref<1x32xf32, #tpu.memory_space<vmem>>) target_semaphore(%84 : memref<!tpu.dma_semaphore, #tpu.memory_space<semaphore_mem>>)
      %c2_i32_42 = arith.constant 2 : i32
      %85 = arith.addi %0, %c2_i32_42 : i32
      %c0_43 = arith.constant 0 : index
      %86 = arith.index_cast %85 : i32 to index
      %87 = memref.load %arg2[%c0_43, %86] : memref<2x8xi32, #tpu.memory_space<smem>>
      %c0_i32_44 = arith.constant 0 : i32
      %88 = arith.addi %c0_i32_44, %c2_i32_42 : i32
      %c0_i32_45 = arith.constant 0 : i32
      %c0_i32_46 = arith.constant 0 : i32
      %89 = tpu.memref_slice %arg8[%87, %c0_i32_46] : memref<64x32xf32, #tpu.memory_space<any>> -> memref<1x32xf32, #tpu.memory_space<any>>
      %c0_i32_47 = arith.constant 0 : i32
      %90 = tpu.memref_slice %arg10[%88, %c0_i32_47] : memref<16x32xf32, #tpu.memory_space<vmem>> -> memref<1x32xf32, #tpu.memory_space<vmem>>
      %91 = tpu.memref_slice %arg11[%c0_i32_45] : memref<2x!tpu.dma_semaphore, #tpu.memory_space<semaphore_mem>> -> memref<1x!tpu.dma_semaphore, #tpu.memory_space<semaphore_mem>>
      %92 = tpu.memref_squeeze %91 : memref<1x!tpu.dma_semaphore, #tpu.memory_space<semaphore_mem>> -> memref<!tpu.dma_semaphore, #tpu.memory_space<semaphore_mem>>
      tpu.enqueue_dma source(%89 : memref<1x32xf32, #tpu.memory_space<any>>) target(%90 : memref<1x32xf32, #tpu.memory_space<vmem>>) target_semaphore(%92 : memref<!tpu.dma_semaphore, #tpu.memory_space<semaphore_mem>>)
      %c3_i32 = arith.constant 3 : i32
      %93 = arith.addi %0, %c3_i32 : i32
      %c0_48 = arith.constant 0 : index
      %94 = arith.index_cast %93 : i32 to index
      %95 = memref.load %arg2[%c0_48, %94] : memref<2x8xi32, #tpu.memory_space<smem>>
      %c0_i32_49 = arith.constant 0 : i32
      %96 = arith.addi %c0_i32_49, %c3_i32 : i32
      %c0_i32_50 = arith.constant 0 : i32
      %c0_i32_51 = arith.constant 0 : i32
      %97 = tpu.memref_slice %arg8[%95, %c0_i32_51] : memref<64x32xf32, #tpu.memory_space<any>> -> memref<1x32xf32, #tpu.memory_space<any>>
      %c0_i32_52 = arith.constant 0 : i32
      %98 = tpu.memref_slice %arg10[%96, %c0_i32_52] : memref<16x32xf32, #tpu.memory_space<vmem>> -> memref<1x32xf32, #tpu.memory_space<vmem>>
      %99 = tpu.memref_slice %arg11[%c0_i32_50] : memref<2x!tpu.dma_semaphore, #tpu.memory_space<semaphore_mem>> -> memref<1x!tpu.dma_semaphore, #tpu.memory_space<semaphore_mem>>
      %100 = tpu.memref_squeeze %99 : memref<1x!tpu.dma_semaphore, #tpu.memory_space<semaphore_mem>> -> memref<!tpu.dma_semaphore, #tpu.memory_space<semaphore_mem>>
      tpu.enqueue_dma source(%97 : memref<1x32xf32, #tpu.memory_space<any>>) target(%98 : memref<1x32xf32, #tpu.memory_space<vmem>>) target_semaphore(%100 : memref<!tpu.dma_semaphore, #tpu.memory_space<semaphore_mem>>)
      %c4_i32 = arith.constant 4 : i32
      %101 = arith.addi %0, %c4_i32 : i32
      %c0_53 = arith.constant 0 : index
      %102 = arith.index_cast %101 : i32 to index
      %103 = memref.load %arg2[%c0_53, %102] : memref<2x8xi32, #tpu.memory_space<smem>>
      %c0_i32_54 = arith.constant 0 : i32
      %104 = arith.addi %c0_i32_54, %c4_i32 : i32
      %c0_i32_55 = arith.constant 0 : i32
      %c0_i32_56 = arith.constant 0 : i32
      %105 = tpu.memref_slice %arg8[%103, %c0_i32_56] : memref<64x32xf32, #tpu.memory_space<any>> -> memref<1x32xf32, #tpu.memory_space<any>>
      %c0_i32_57 = arith.constant 0 : i32
      %106 = tpu.memref_slice %arg10[%104, %c0_i32_57] : memref<16x32xf32, #tpu.memory_space<vmem>> -> memref<1x32xf32, #tpu.memory_space<vmem>>
      %107 = tpu.memref_slice %arg11[%c0_i32_55] : memref<2x!tpu.dma_semaphore, #tpu.memory_space<semaphore_mem>> -> memref<1x!tpu.dma_semaphore, #tpu.memory_space<semaphore_mem>>
      %108 = tpu.memref_squeeze %107 : memref<1x!tpu.dma_semaphore, #tpu.memory_space<semaphore_mem>> -> memref<!tpu.dma_semaphore, #tpu.memory_space<semaphore_mem>>
      tpu.enqueue_dma source(%105 : memref<1x32xf32, #tpu.memory_space<any>>) target(%106 : memref<1x32xf32, #tpu.memory_space<vmem>>) target_semaphore(%108 : memref<!tpu.dma_semaphore, #tpu.memory_space<semaphore_mem>>)
      %c5_i32 = arith.constant 5 : i32
      %109 = arith.addi %0, %c5_i32 : i32
      %c0_58 = arith.constant 0 : index
      %110 = arith.index_cast %109 : i32 to index
      %111 = memref.load %arg2[%c0_58, %110] : memref<2x8xi32, #tpu.memory_space<smem>>
      %c0_i32_59 = arith.constant 0 : i32
      %112 = arith.addi %c0_i32_59, %c5_i32 : i32
      %c0_i32_60 = arith.constant 0 : i32
      %c0_i32_61 = arith.constant 0 : i32
      %113 = tpu.memref_slice %arg8[%111, %c0_i32_61] : memref<64x32xf32, #tpu.memory_space<any>> -> memref<1x32xf32, #tpu.memory_space<any>>
      %c0_i32_62 = arith.constant 0 : i32
      %114 = tpu.memref_slice %arg10[%112, %c0_i32_62] : memref<16x32xf32, #tpu.memory_space<vmem>> -> memref<1x32xf32, #tpu.memory_space<vmem>>
      %115 = tpu.memref_slice %arg11[%c0_i32_60] : memref<2x!tpu.dma_semaphore, #tpu.memory_space<semaphore_mem>> -> memref<1x!tpu.dma_semaphore, #tpu.memory_space<semaphore_mem>>
      %116 = tpu.memref_squeeze %115 : memref<1x!tpu.dma_semaphore, #tpu.memory_space<semaphore_mem>> -> memref<!tpu.dma_semaphore, #tpu.memory_space<semaphore_mem>>
      tpu.enqueue_dma source(%113 : memref<1x32xf32, #tpu.memory_space<any>>) target(%114 : memref<1x32xf32, #tpu.memory_space<vmem>>) target_semaphore(%116 : memref<!tpu.dma_semaphore, #tpu.memory_space<semaphore_mem>>)
      %c6_i32 = arith.constant 6 : i32
      %117 = arith.addi %0, %c6_i32 : i32
      %c0_63 = arith.constant 0 : index
      %118 = arith.index_cast %117 : i32 to index
      %119 = memref.load %arg2[%c0_63, %118] : memref<2x8xi32, #tpu.memory_space<smem>>
      %c0_i32_64 = arith.constant 0 : i32
      %120 = arith.addi %c0_i32_64, %c6_i32 : i32
      %c0_i32_65 = arith.constant 0 : i32
      %c0_i32_66 = arith.constant 0 : i32
      %121 = tpu.memref_slice %arg8[%119, %c0_i32_66] : memref<64x32xf32, #tpu.memory_space<any>> -> memref<1x32xf32, #tpu.memory_space<any>>
      %c0_i32_67 = arith.constant 0 : i32
      %122 = tpu.memref_slice %arg10[%120, %c0_i32_67] : memref<16x32xf32, #tpu.memory_space<vmem>> -> memref<1x32xf32, #tpu.memory_space<vmem>>
      %123 = tpu.memref_slice %arg11[%c0_i32_65] : memref<2x!tpu.dma_semaphore, #tpu.memory_space<semaphore_mem>> -> memref<1x!tpu.dma_semaphore, #tpu.memory_space<semaphore_mem>>
      %124 = tpu.memref_squeeze %123 : memref<1x!tpu.dma_semaphore, #tpu.memory_space<semaphore_mem>> -> memref<!tpu.dma_semaphore, #tpu.memory_space<semaphore_mem>>
      tpu.enqueue_dma source(%121 : memref<1x32xf32, #tpu.memory_space<any>>) target(%122 : memref<1x32xf32, #tpu.memory_space<vmem>>) target_semaphore(%124 : memref<!tpu.dma_semaphore, #tpu.memory_space<semaphore_mem>>)
      %c7_i32 = arith.constant 7 : i32
      %125 = arith.addi %0, %c7_i32 : i32
      %c0_68 = arith.constant 0 : index
      %126 = arith.index_cast %125 : i32 to index
      %127 = memref.load %arg2[%c0_68, %126] : memref<2x8xi32, #tpu.memory_space<smem>>
      %c0_i32_69 = arith.constant 0 : i32
      %128 = arith.addi %c0_i32_69, %c7_i32 : i32
      %c0_i32_70 = arith.constant 0 : i32
      %c0_i32_71 = arith.constant 0 : i32
      %129 = tpu.memref_slice %arg8[%127, %c0_i32_71] : memref<64x32xf32, #tpu.memory_space<any>> -> memref<1x32xf32, #tpu.memory_space<any>>
      %c0_i32_72 = arith.constant 0 : i32
      %130 = tpu.memref_slice %arg10[%128, %c0_i32_72] : memref<16x32xf32, #tpu.memory_space<vmem>> -> memref<1x32xf32, #tpu.memory_space<vmem>>
      %131 = tpu.memref_slice %arg11[%c0_i32_70] : memref<2x!tpu.dma_semaphore, #tpu.memory_space<semaphore_mem>> -> memref<1x!tpu.dma_semaphore, #tpu.memory_space<semaphore_mem>>
      %132 = tpu.memref_squeeze %131 : memref<1x!tpu.dma_semaphore, #tpu.memory_space<semaphore_mem>> -> memref<!tpu.dma_semaphore, #tpu.memory_space<semaphore_mem>>
      tpu.enqueue_dma source(%129 : memref<1x32xf32, #tpu.memory_space<any>>) target(%130 : memref<1x32xf32, #tpu.memory_space<vmem>>) target_semaphore(%132 : memref<!tpu.dma_semaphore, #tpu.memory_space<semaphore_mem>>)
      %c8_i32_73 = arith.constant 8 : i32
    } else {
    }
    %c1_i32_2 = arith.constant 1 : i32
    %6 = arith.addi %arg1, %c1_i32_2 : i32
    %c2_i32 = arith.constant 2 : i32
    %7 = arith.cmpi slt, %6, %c2_i32 : i32
    %8 = arith.extui %7 : i1 to i32
    %c0_i32_3 = arith.constant 0 : i32
    %9 = arith.cmpi ne, %8, %c0_i32_3 : i32
    scf.if %9 {
      %c1_i32_30 = arith.constant 1 : i32
      %69 = arith.addi %arg1, %c1_i32_30 : i32
      %c8_i32_31 = arith.constant 8 : i32
      %70 = arith.muli %2, %c8_i32_31 : i32
      %c0_i32_32 = arith.constant 0 : i32
      %71 = arith.addi %0, %c0_i32_32 : i32
      %72 = arith.index_cast %69 : i32 to index
      %73 = arith.index_cast %71 : i32 to index
      %74 = memref.load %arg2[%72, %73] : memref<2x8xi32, #tpu.memory_space<smem>>
      %75 = arith.addi %70, %c0_i32_32 : i32
      %c0_i32_33 = arith.constant 0 : i32
      %76 = tpu.memref_slice %arg8[%74, %c0_i32_33] : memref<64x32xf32, #tpu.memory_space<any>> -> memref<1x32xf32, #tpu.memory_space<any>>
      %c0_i32_34 = arith.constant 0 : i32
      %77 = tpu.memref_slice %arg10[%75, %c0_i32_34] : memref<16x32xf32, #tpu.memory_space<vmem>> -> memref<1x32xf32, #tpu.memory_space<vmem>>
      %78 = tpu.memref_slice %arg11[%2] : memref<2x!tpu.dma_semaphore, #tpu.memory_space<semaphore_mem>> -> memref<1x!tpu.dma_semaphore, #tpu.memory_space<semaphore_mem>>
      %79 = tpu.memref_squeeze %78 : memref<1x!tpu.dma_semaphore, #tpu.memory_space<semaphore_mem>> -> memref<!tpu.dma_semaphore, #tpu.memory_space<semaphore_mem>>
      tpu.enqueue_dma source(%76 : memref<1x32xf32, #tpu.memory_space<any>>) target(%77 : memref<1x32xf32, #tpu.memory_space<vmem>>) target_semaphore(%79 : memref<!tpu.dma_semaphore, #tpu.memory_space<semaphore_mem>>)
      %c1_i32_35 = arith.constant 1 : i32
      %80 = arith.addi %0, %c1_i32_35 : i32
      %81 = arith.index_cast %69 : i32 to index
      %82 = arith.index_cast %80 : i32 to index
      %83 = memref.load %arg2[%81, %82] : memref<2x8xi32, #tpu.memory_space<smem>>
      %84 = arith.addi %70, %c1_i32_35 : i32
      %c0_i32_36 = arith.constant 0 : i32
      %85 = tpu.memref_slice %arg8[%83, %c0_i32_36] : memref<64x32xf32, #tpu.memory_space<any>> -> memref<1x32xf32, #tpu.memory_space<any>>
      %c0_i32_37 = arith.constant 0 : i32
      %86 = tpu.memref_slice %arg10[%84, %c0_i32_37] : memref<16x32xf32, #tpu.memory_space<vmem>> -> memref<1x32xf32, #tpu.memory_space<vmem>>
      %87 = tpu.memref_slice %arg11[%2] : memref<2x!tpu.dma_semaphore, #tpu.memory_space<semaphore_mem>> -> memref<1x!tpu.dma_semaphore, #tpu.memory_space<semaphore_mem>>
      %88 = tpu.memref_squeeze %87 : memref<1x!tpu.dma_semaphore, #tpu.memory_space<semaphore_mem>> -> memref<!tpu.dma_semaphore, #tpu.memory_space<semaphore_mem>>
      tpu.enqueue_dma source(%85 : memref<1x32xf32, #tpu.memory_space<any>>) target(%86 : memref<1x32xf32, #tpu.memory_space<vmem>>) target_semaphore(%88 : memref<!tpu.dma_semaphore, #tpu.memory_space<semaphore_mem>>)
      %c2_i32_38 = arith.constant 2 : i32
      %89 = arith.addi %0, %c2_i32_38 : i32
      %90 = arith.index_cast %69 : i32 to index
      %91 = arith.index_cast %89 : i32 to index
      %92 = memref.load %arg2[%90, %91] : memref<2x8xi32, #tpu.memory_space<smem>>
      %93 = arith.addi %70, %c2_i32_38 : i32
      %c0_i32_39 = arith.constant 0 : i32
      %94 = tpu.memref_slice %arg8[%92, %c0_i32_39] : memref<64x32xf32, #tpu.memory_space<any>> -> memref<1x32xf32, #tpu.memory_space<any>>
      %c0_i32_40 = arith.constant 0 : i32
      %95 = tpu.memref_slice %arg10[%93, %c0_i32_40] : memref<16x32xf32, #tpu.memory_space<vmem>> -> memref<1x32xf32, #tpu.memory_space<vmem>>
      %96 = tpu.memref_slice %arg11[%2] : memref<2x!tpu.dma_semaphore, #tpu.memory_space<semaphore_mem>> -> memref<1x!tpu.dma_semaphore, #tpu.memory_space<semaphore_mem>>
      %97 = tpu.memref_squeeze %96 : memref<1x!tpu.dma_semaphore, #tpu.memory_space<semaphore_mem>> -> memref<!tpu.dma_semaphore, #tpu.memory_space<semaphore_mem>>
      tpu.enqueue_dma source(%94 : memref<1x32xf32, #tpu.memory_space<any>>) target(%95 : memref<1x32xf32, #tpu.memory_space<vmem>>) target_semaphore(%97 : memref<!tpu.dma_semaphore, #tpu.memory_space<semaphore_mem>>)
      %c3_i32 = arith.constant 3 : i32
      %98 = arith.addi %0, %c3_i32 : i32
      %99 = arith.index_cast %69 : i32 to index
      %100 = arith.index_cast %98 : i32 to index
      %101 = memref.load %arg2[%99, %100] : memref<2x8xi32, #tpu.memory_space<smem>>
      %102 = arith.addi %70, %c3_i32 : i32
      %c0_i32_41 = arith.constant 0 : i32
      %103 = tpu.memref_slice %arg8[%101, %c0_i32_41] : memref<64x32xf32, #tpu.memory_space<any>> -> memref<1x32xf32, #tpu.memory_space<any>>
      %c0_i32_42 = arith.constant 0 : i32
      %104 = tpu.memref_slice %arg10[%102, %c0_i32_42] : memref<16x32xf32, #tpu.memory_space<vmem>> -> memref<1x32xf32, #tpu.memory_space<vmem>>
      %105 = tpu.memref_slice %arg11[%2] : memref<2x!tpu.dma_semaphore, #tpu.memory_space<semaphore_mem>> -> memref<1x!tpu.dma_semaphore, #tpu.memory_space<semaphore_mem>>
      %106 = tpu.memref_squeeze %105 : memref<1x!tpu.dma_semaphore, #tpu.memory_space<semaphore_mem>> -> memref<!tpu.dma_semaphore, #tpu.memory_space<semaphore_mem>>
      tpu.enqueue_dma source(%103 : memref<1x32xf32, #tpu.memory_space<any>>) target(%104 : memref<1x32xf32, #tpu.memory_space<vmem>>) target_semaphore(%106 : memref<!tpu.dma_semaphore, #tpu.memory_space<semaphore_mem>>)
      %c4_i32 = arith.constant 4 : i32
      %107 = arith.addi %0, %c4_i32 : i32
      %108 = arith.index_cast %69 : i32 to index
      %109 = arith.index_cast %107 : i32 to index
      %110 = memref.load %arg2[%108, %109] : memref<2x8xi32, #tpu.memory_space<smem>>
      %111 = arith.addi %70, %c4_i32 : i32
      %c0_i32_43 = arith.constant 0 : i32
      %112 = tpu.memref_slice %arg8[%110, %c0_i32_43] : memref<64x32xf32, #tpu.memory_space<any>> -> memref<1x32xf32, #tpu.memory_space<any>>
      %c0_i32_44 = arith.constant 0 : i32
      %113 = tpu.memref_slice %arg10[%111, %c0_i32_44] : memref<16x32xf32, #tpu.memory_space<vmem>> -> memref<1x32xf32, #tpu.memory_space<vmem>>
      %114 = tpu.memref_slice %arg11[%2] : memref<2x!tpu.dma_semaphore, #tpu.memory_space<semaphore_mem>> -> memref<1x!tpu.dma_semaphore, #tpu.memory_space<semaphore_mem>>
      %115 = tpu.memref_squeeze %114 : memref<1x!tpu.dma_semaphore, #tpu.memory_space<semaphore_mem>> -> memref<!tpu.dma_semaphore, #tpu.memory_space<semaphore_mem>>
      tpu.enqueue_dma source(%112 : memref<1x32xf32, #tpu.memory_space<any>>) target(%113 : memref<1x32xf32, #tpu.memory_space<vmem>>) target_semaphore(%115 : memref<!tpu.dma_semaphore, #tpu.memory_space<semaphore_mem>>)
      %c5_i32 = arith.constant 5 : i32
      %116 = arith.addi %0, %c5_i32 : i32
      %117 = arith.index_cast %69 : i32 to index
      %118 = arith.index_cast %116 : i32 to index
      %119 = memref.load %arg2[%117, %118] : memref<2x8xi32, #tpu.memory_space<smem>>
      %120 = arith.addi %70, %c5_i32 : i32
      %c0_i32_45 = arith.constant 0 : i32
      %121 = tpu.memref_slice %arg8[%119, %c0_i32_45] : memref<64x32xf32, #tpu.memory_space<any>> -> memref<1x32xf32, #tpu.memory_space<any>>
      %c0_i32_46 = arith.constant 0 : i32
      %122 = tpu.memref_slice %arg10[%120, %c0_i32_46] : memref<16x32xf32, #tpu.memory_space<vmem>> -> memref<1x32xf32, #tpu.memory_space<vmem>>
      %123 = tpu.memref_slice %arg11[%2] : memref<2x!tpu.dma_semaphore, #tpu.memory_space<semaphore_mem>> -> memref<1x!tpu.dma_semaphore, #tpu.memory_space<semaphore_mem>>
      %124 = tpu.memref_squeeze %123 : memref<1x!tpu.dma_semaphore, #tpu.memory_space<semaphore_mem>> -> memref<!tpu.dma_semaphore, #tpu.memory_space<semaphore_mem>>
      tpu.enqueue_dma source(%121 : memref<1x32xf32, #tpu.memory_space<any>>) target(%122 : memref<1x32xf32, #tpu.memory_space<vmem>>) target_semaphore(%124 : memref<!tpu.dma_semaphore, #tpu.memory_space<semaphore_mem>>)
      %c6_i32 = arith.constant 6 : i32
      %125 = arith.addi %0, %c6_i32 : i32
      %126 = arith.index_cast %69 : i32 to index
      %127 = arith.index_cast %125 : i32 to index
      %128 = memref.load %arg2[%126, %127] : memref<2x8xi32, #tpu.memory_space<smem>>
      %129 = arith.addi %70, %c6_i32 : i32
      %c0_i32_47 = arith.constant 0 : i32
      %130 = tpu.memref_slice %arg8[%128, %c0_i32_47] : memref<64x32xf32, #tpu.memory_space<any>> -> memref<1x32xf32, #tpu.memory_space<any>>
      %c0_i32_48 = arith.constant 0 : i32
      %131 = tpu.memref_slice %arg10[%129, %c0_i32_48] : memref<16x32xf32, #tpu.memory_space<vmem>> -> memref<1x32xf32, #tpu.memory_space<vmem>>
      %132 = tpu.memref_slice %arg11[%2] : memref<2x!tpu.dma_semaphore, #tpu.memory_space<semaphore_mem>> -> memref<1x!tpu.dma_semaphore, #tpu.memory_space<semaphore_mem>>
      %133 = tpu.memref_squeeze %132 : memref<1x!tpu.dma_semaphore, #tpu.memory_space<semaphore_mem>> -> memref<!tpu.dma_semaphore, #tpu.memory_space<semaphore_mem>>
      tpu.enqueue_dma source(%130 : memref<1x32xf32, #tpu.memory_space<any>>) target(%131 : memref<1x32xf32, #tpu.memory_space<vmem>>) target_semaphore(%133 : memref<!tpu.dma_semaphore, #tpu.memory_space<semaphore_mem>>)
      %c7_i32 = arith.constant 7 : i32
      %134 = arith.addi %0, %c7_i32 : i32
      %135 = arith.index_cast %69 : i32 to index
      %136 = arith.index_cast %134 : i32 to index
      %137 = memref.load %arg2[%135, %136] : memref<2x8xi32, #tpu.memory_space<smem>>
      %138 = arith.addi %70, %c7_i32 : i32
      %c0_i32_49 = arith.constant 0 : i32
      %139 = tpu.memref_slice %arg8[%137, %c0_i32_49] : memref<64x32xf32, #tpu.memory_space<any>> -> memref<1x32xf32, #tpu.memory_space<any>>
      %c0_i32_50 = arith.constant 0 : i32
      %140 = tpu.memref_slice %arg10[%138, %c0_i32_50] : memref<16x32xf32, #tpu.memory_space<vmem>> -> memref<1x32xf32, #tpu.memory_space<vmem>>
      %141 = tpu.memref_slice %arg11[%2] : memref<2x!tpu.dma_semaphore, #tpu.memory_space<semaphore_mem>> -> memref<1x!tpu.dma_semaphore, #tpu.memory_space<semaphore_mem>>
      %142 = tpu.memref_squeeze %141 : memref<1x!tpu.dma_semaphore, #tpu.memory_space<semaphore_mem>> -> memref<!tpu.dma_semaphore, #tpu.memory_space<semaphore_mem>>
      tpu.enqueue_dma source(%139 : memref<1x32xf32, #tpu.memory_space<any>>) target(%140 : memref<1x32xf32, #tpu.memory_space<vmem>>) target_semaphore(%142 : memref<!tpu.dma_semaphore, #tpu.memory_space<semaphore_mem>>)
      %c8_i32_51 = arith.constant 8 : i32
    } else {
    }
    %c0 = arith.constant 0 : index
    %c0_4 = arith.constant 0 : index
    %c0_5 = arith.constant 0 : index
    %10 = vector.load %arg3[%c0, %c0_4, %c0_5] : memref<1x8x1xi32, #tpu.memory_space<vmem>>, vector<1x8x1xi32>
    %11 = vector.shape_cast %10 : vector<1x8x1xi32> to vector<8x1xi32>
    %c0_i32_6 = arith.constant 0 : i32
    %12 = vector.broadcast %c0_i32_6 : i32 to vector<8x1xi32>
    %13 = arith.cmpi eq, %11, %12 : vector<8x1xi32>
    %c0_7 = arith.constant 0 : index
    %c0_8 = arith.constant 0 : index
    %14 = vector.load %arg5[%c0_7, %c0_8] : memref<3x32xf32, #tpu.memory_space<vmem>>, vector<1x32xf32>
    %c1_i32_9 = arith.constant 1 : i32
    %15 = vector.broadcast %c1_i32_9 : i32 to vector<8x1xi32>
    %16 = arith.cmpi eq, %11, %15 : vector<8x1xi32>
    %c1 = arith.constant 1 : index
    %c0_10 = arith.constant 0 : index
    %17 = vector.load %arg5[%c1, %c0_10] : memref<3x32xf32, #tpu.memory_space<vmem>>, vector<1x32xf32>
    %c2 = arith.constant 2 : index
    %c0_11 = arith.constant 0 : index
    %18 = vector.load %arg5[%c2, %c0_11] : memref<3x32xf32, #tpu.memory_space<vmem>>, vector<1x32xf32>
    %19 = vector.shape_cast %16 : vector<8x1xi1> to vector<8x1xi1>
    %20 = vector.broadcast %19 : vector<8x1xi1> to vector<8x32xi1>
    %21 = vector.shape_cast %17 : vector<1x32xf32> to vector<1x32xf32>
    %22 = vector.broadcast %21 : vector<1x32xf32> to vector<8x32xf32>
    %23 = vector.shape_cast %18 : vector<1x32xf32> to vector<1x32xf32>
    %24 = vector.broadcast %23 : vector<1x32xf32> to vector<8x32xf32>
    %25 = arith.select %20, %22, %24 : vector<8x32xi1>, vector<8x32xf32>
    %26 = vector.shape_cast %13 : vector<8x1xi1> to vector<8x1xi1>
    %27 = vector.broadcast %26 : vector<8x1xi1> to vector<8x32xi1>
    %28 = vector.shape_cast %14 : vector<1x32xf32> to vector<1x32xf32>
    %29 = vector.broadcast %28 : vector<1x32xf32> to vector<8x32xf32>
    %30 = arith.select %27, %29, %25 : vector<8x32xi1>, vector<8x32xf32>
    %c0_12 = arith.constant 0 : index
    %c0_13 = arith.constant 0 : index
    %31 = vector.load %arg4[%c0_12, %c0_13] : memref<8x32xf32, #tpu.memory_space<vmem>>, vector<8x32xf32>
    %32 = arith.addf %31, %30 : vector<8x32xf32>
    %c8_i32_14 = arith.constant 8 : i32
    %33 = arith.muli %1, %c8_i32_14 : i32
    %34 = tpu.assume_multiple %33, 8 : i32
    %c0_i32_15 = arith.constant 0 : i32
    %c0_i32_16 = arith.constant 0 : i32
    %35 = tpu.memref_slice %arg8[%c0_i32_15, %c0_i32_16] : memref<64x32xf32, #tpu.memory_space<any>> -> memref<8x32xf32, #tpu.memory_space<any>>
    %c0_i32_17 = arith.constant 0 : i32
    %36 = tpu.memref_slice %arg10[%34, %c0_i32_17] : memref<16x32xf32, #tpu.memory_space<vmem>> -> memref<8x32xf32, #tpu.memory_space<vmem>>
    %37 = tpu.memref_slice %arg11[%1] : memref<2x!tpu.dma_semaphore, #tpu.memory_space<semaphore_mem>> -> memref<1x!tpu.dma_semaphore, #tpu.memory_space<semaphore_mem>>
    %38 = tpu.memref_squeeze %37 : memref<1x!tpu.dma_semaphore, #tpu.memory_space<semaphore_mem>> -> memref<!tpu.dma_semaphore, #tpu.memory_space<semaphore_mem>>
    tpu.wait_dma2 semaphore(%38 : memref<!tpu.dma_semaphore, #tpu.memory_space<semaphore_mem>>) src(%35 : memref<8x32xf32, #tpu.memory_space<any>>) dst(%36 : memref<8x32xf32, #tpu.memory_space<vmem>>)
    %39 = arith.index_cast %34 : i32 to index
    %c0_18 = arith.constant 0 : index
    %40 = vector.load %arg10[%39, %c0_18] : memref<16x32xf32, #tpu.memory_space<vmem>>, vector<8x32xf32>
    %41 = arith.addf %40, %32 : vector<8x32xf32>
    %cst = arith.constant dense<0.000000e+00> : vector<8xf32>
    %42 = vector.multi_reduction <add>, %41, %cst [1] : vector<8x32xf32> to vector<8xf32>
    %43 = vector.shape_cast %42 : vector<8xf32> to vector<8x1xf32>
    %cst_19 = arith.constant 3.200000e+01 : f32
    %44 = vector.broadcast %cst_19 : f32 to vector<8x1xf32>
    %45 = arith.divf %43, %44 : vector<8x1xf32>
    %46 = vector.broadcast %45 : vector<8x1xf32> to vector<8x32xf32>
    %47 = arith.subf %41, %46 : vector<8x32xf32>
    %48 = arith.mulf %47, %47 : vector<8x32xf32>
    %cst_20 = arith.constant dense<0.000000e+00> : vector<8xf32>
    %49 = vector.multi_reduction <add>, %48, %cst_20 [1] : vector<8x32xf32> to vector<8xf32>
    %50 = vector.shape_cast %49 : vector<8xf32> to vector<8x1xf32>
    %cst_21 = arith.constant 3.200000e+01 : f32
    %51 = vector.broadcast %cst_21 : f32 to vector<8x1xf32>
    %52 = arith.divf %50, %51 : vector<8x1xf32>
    %53 = vector.broadcast %45 : vector<8x1xf32> to vector<8x32xf32>
    %54 = arith.subf %41, %53 : vector<8x32xf32>
    %cst_22 = arith.constant 9.99999997E-7 : f32
    %55 = vector.broadcast %cst_22 : f32 to vector<8x1xf32>
    %56 = arith.addf %52, %55 : vector<8x1xf32>
    %57 = math.rsqrt %56 : vector<8x1xf32>
    %58 = vector.broadcast %57 : vector<8x1xf32> to vector<8x32xf32>
    %59 = arith.mulf %54, %58 : vector<8x32xf32>
    %c0_23 = arith.constant 0 : index
    %c0_24 = arith.constant 0 : index
    %60 = vector.load %arg6[%c0_23, %c0_24] : memref<1x32xf32, #tpu.memory_space<vmem>>, vector<1x32xf32>
    %61 = vector.broadcast %60 : vector<1x32xf32> to vector<8x32xf32>
    %62 = arith.mulf %61, %59 : vector<8x32xf32>
    %c0_25 = arith.constant 0 : index
    %c0_26 = arith.constant 0 : index
    %63 = vector.load %arg7[%c0_25, %c0_26] : memref<1x32xf32, #tpu.memory_space<vmem>>, vector<1x32xf32>
    %64 = vector.broadcast %63 : vector<1x32xf32> to vector<8x32xf32>
    %65 = arith.addf %62, %64 : vector<8x32xf32>
    %c0_27 = arith.constant 0 : index
    %c0_28 = arith.constant 0 : index
    %c0_29 = arith.constant 0 : index
    %66 = vector.load %arg9[%c0_27, %c0_28, %c0_29] : memref<1x8x32xf32, #tpu.memory_space<vmem>>, vector<1x8x32xf32>
    %67 = vector.shape_cast %66 : vector<1x8x32xf32> to vector<8x32xf32>
    %68 = vector.shape_cast %65 : vector<8x32xf32> to vector<1x8x32xf32>
    tpu.vector_store %arg9[%c0_27, %c0_28, %c0_29], %68 {strides = array<i32>} : memref<1x8x32xf32, #tpu.memory_space<vmem>>, vector<1x8x32xf32>,
    return
  }
  func.func @transform_0(%arg0: i32, %arg1: i32, %arg2: memref<2x8xi32, #tpu.memory_space<smem>>) -> (i32, i32, i32) {
    %c0_i32 = arith.constant 0 : i32
    %c0_i32_0 = arith.constant 0 : i32
    return %arg1, %arg0, %c0_i32 : i32, i32, i32
  }
  func.func @transform_1(%arg0: i32, %arg1: i32, %arg2: memref<2x8xi32, #tpu.memory_space<smem>>) -> (i32, i32) {
    %c0_i32 = arith.constant 0 : i32
    %c0_i32_0 = arith.constant 0 : i32
    return %arg0, %c0_i32 : i32, i32
  }
  func.func @transform_2(%arg0: i32, %arg1: i32, %arg2: memref<2x8xi32, #tpu.memory_space<smem>>) -> (i32, i32) {
    %c0_i32 = arith.constant 0 : i32
    %c0_i32_0 = arith.constant 0 : i32
    %c0_i32_1 = arith.constant 0 : i32
    return %c0_i32, %c0_i32_0 : i32, i32
  }
  func.func @transform_3(%arg0: i32, %arg1: i32, %arg2: memref<2x8xi32, #tpu.memory_space<smem>>) -> (i32, i32) {
    %c0_i32 = arith.constant 0 : i32
    %c0_i32_0 = arith.constant 0 : i32
    %c0_i32_1 = arith.constant 0 : i32
    return %c0_i32, %c0_i32_0 : i32, i32
  }
  func.func @transform_4(%arg0: i32, %arg1: i32, %arg2: memref<2x8xi32, #tpu.memory_space<smem>>) -> (i32, i32) {
    %c0_i32 = arith.constant 0 : i32
    %c0_i32_0 = arith.constant 0 : i32
    %c0_i32_1 = arith.constant 0 : i32
    return %c0_i32, %c0_i32_0 : i32, i32
  }
  func.func @transform_6(%arg0: i32, %arg1: i32, %arg2: memref<2x8xi32, #tpu.memory_space<smem>>) -> (i32, i32, i32) {
    %c0_i32 = arith.constant 0 : i32
    %c0_i32_0 = arith.constant 0 : i32
    return %arg1, %arg0, %c0_i32 : i32, i32, i32
  }
}

</mosaic_0001>

<bundles_post_ra>
// kernel: tpu_custom_call.1
= control target key start
LH: loop header
LB: loop body
LE: loop exit
PB: predicated region body
PF: predicated region fallthrough
CT: control target
= control target key end

     0   :  { %s2047_s0 = inlined_call_operand.vmem [shape: s32[2,8], index: 0, kind: input, shape index: {}]   ;;  %s2048_s1 = inlined_call_operand.vmem [shape: s32[2,8,1], index: 1, kind: input, shape index: {}]   ;;  %s2049_s2 = inlined_call_operand.vmem [shape: f32[8,32], index: 2, kind: input, shape index: {}]   ;;  %s2050_s3 = inlined_call_operand.vmem [shape: f32[3,32], index: 3, kind: input, shape index: {}]   ;;  %s2051_s4 = inlined_call_operand.vmem [shape: f32[1,32], index: 4, kind: input, shape index: {}]   ;;  %s2052_s5 = inlined_call_operand.vmem [shape: f32[1,32], index: 5, kind: input, shape index: {}]   ;;  %s2053_s6 = inlined_call_operand.vmem [shape: f32[64,32], index: 6, kind: input, shape index: {}]   ;;  %s2054_s7 = inlined_call_operand.hbm [shape: f32[2,8,32], index: 7, kind: output, shape index: {}]  }
   0x1   :  { %2057 = sst [smem:[#allocation28_spill]] %s2048_s1  ;;  %s12_s26 = sshll.u32 %s2047_s0, 4  ;;  %s13_s26 = int_to_ptr.vmem [resolvable:$true] %s12_s26 }
   0x2   :  { %s1682_s27 = scalar_lea.vmem %s13_s26, 32  ;;  %p1687_p1 = scmp.lt.s32.totalorder %s13_s26, %s13_s26 }
   0x3   :  { %p1683_p0 = scmp.ne.s32.totalorder %s13_s26, %s1682_s27  ;;  %p1688_p2 = scmp.lt.s32.totalorder %s1682_s27, %s1682_s27 }
   0x5   :  { %p1689_p3 = por %p1688_p2, %p1687_p1 }
   0x7   :  { %p1690_p4 = pnand %p1689_p3, %p1683_p0 }
   0x9   :  { %1693 = shalt.err (!%p1690_p4)  }
   0xa   :  { %s1776_s28 = smov [#allocation5]  }
   0xb   :  { %15 = dma.vmem_to_smem %s13_s26, 32, %s1776_s28, [#allocation4] }
   0xc   :  { %1744 = dma.done.wait [#allocation4], 32 }
   0xd   :  { %1745 = vsyncadd [#allocation4], 4294967264 }
   0xe   :  { %17 = sfence }
   0xf   :  { %18 = vsyncpa [#allocation7], 0 }
  0x10   :  { %20 = vsyncpa [#allocation7 + $0x1], 0  ;;  %s1822_s29 = smov 0   ;;  %s1824_s30 = smov 0  }
  0x11   :  { %s1826_s0 = smov 0   ;;  %s1828_s8 = smov 0  }
  0x12   :  { %s1830_s9 = smov 0   ;;  %s1832_s10 = smov 0  }
  0x13 LB: > { %s1547_s11 = sadd.s32 4294967295, %s1774_s10   ;;  %s1548_s12 = sadd.s32 4294967294, %s1774_s10   ;;  %s1774_s10 = sphi %s1832_s10, %s26_s10   ;;  %s1770_s9 = sphi %s1830_s9, %s2072_s9   ;;  %s1766_s8 = sphi %s1828_s8, %s2071_s8   ;;  %s1762_s0 = sphi %s1826_s0, %s2070_s0   ;;  %s1758_s30 = sphi %s1824_s30, %s2069_s30   ;;  %s1754_s29 = sphi %s1822_s29, %s2068_s29  }
  0x14   : > { %s35_s13 = sadd.s32 1, %s1770_s9  ;;  %s164_s14 = sadd.s32 1, %s1762_s0 }
  0x15   : > { %p36_p5 = scmp.ge.s32.totalorder %s35_s13, 2  ;;  %p174_p6 = scmp.ne.s32.totalorder %s1762_s0, %s1758_s30 }
  0x16   : > { %p175_p7 = scmp.eq.s32.totalorder %s1547_s11, 1  ;;  %p180_p8 = scmp.ne.s32.totalorder %s1758_s30, %s1754_s29 }
  0x17   : > { %s2074_s13 = smov (%p36_p5, %s35_s13), 0  ;;  %p181_p10 = scmp.eq.s32.totalorder %s1548_s12, 1 }
  0x18   : > { %2058 = sst [smem:[#allocation27_spill]] %s2074_s13  ;;  %p1862_p9 = por %p175_p7, %p174_p6 }
  0x19   : > { %s159_s16 = ssub.s32 %s1770_s9, %s2074_s13  ;;  %p1552_p11 = scmp.ge.s32.totalorder %s1774_s10, 1 }
  0x1a   : > { %p162_p12 = scmp.eq.s32.totalorder %s159_s16, 0  ;;  %p1869_p13 = por %p181_p10, %p180_p8 }
  0x1b   : > { %p225_p0 = scmp.lt.s32.totalorder %s1774_s10, 3 }
  0x1c   : > { %s1875_s18 = scalar_select %p162_p12, %s1762_s0, %s164_s14  }
  0x1d   : > { %p226_p1 = pnand %p1552_p11, %p225_p0 }
  0x1e   : > { %s2055_s19 = sand.u32 (!%p226_p1), 1, %s1758_s30   ;;  %p259_p2 = scmp.lt.s32.totalorder (!%p226_p1), %s1766_s8, 1 }
  0x1f   : > { %229 = sbr.rel (%p226_p1) target bundleno = 654 (0x28e), region = 40  ;;  %s1881_s20 = sshll.u32 (!%p226_p1), %s2055_s19, 3 }
  0x20   : > { %s1884_s21 = sand.u32 (!%p226_p1), 1, %s1766_s8  ;;  %s2061_s1 = sld [smem:[#allocation28_spill]] (!%p226_p1) }
  0x21   : > { %p1555_p3 = scmp.ne.s32.totalorder (!%p226_p1), %s1766_s8, 0 }
  0x24   : > { %s260_s23 = scalar_select %p259_p2, %s1766_s8, 1 }
  0x25   : > { %276 = sbr.rel (%p1555_p3) target bundleno = 110 (0x6e), region = 44  ;;  %s277_s11 = sld [smem:[#allocation5]] (!%p1555_p3) }
  0x26   : > { %s1554_s24 = sshll.u32 %s260_s23, 3 }
  0x27   : > { %s1891_s27 = scalar_lea.vmem %s2061_s1, %s1554_s24 }
  0x2b   : > { %s278_s16 = scalar_lea.vmem %s2053_s6, %s277_s11 }
  0x2c   : > { %v297_v0 = vld [vmem:[%s278_s16] sm:$0x1] }
  0x2d   : > { %298 = vst [vmem:[#allocation2] sm:$0x1] %v297_v0 }
  0x2e   : > { %324 = vsyncadd [#allocation3], 16  ;;  %s1556_s19 = sld [smem:[#allocation5 + $0x1]] }
  0x34   : > { %s327_s13 = scalar_lea.vmem %s2053_s6, %s1556_s19 }
  0x35   : > { %v347_v1 = vld [vmem:[%s327_s13] sm:$0x1] }
  0x36   : > { %348 = vst [vmem:[#allocation2 + $0x1] sm:$0x1] %v347_v1 }
  0x37   : > { %374 = vsyncadd [#allocation3], 16  ;;  %s1557_s24 = sld [smem:[#allocation5 + $0x2]] }
  0x3d   : > { %s377_s28 = scalar_lea.vmem %s2053_s6, %s1557_s24 }
  0x3e   : > { %v397_v2 = vld [vmem:[%s377_s28] sm:$0x1] }
  0x3f   : > { %398 = vst [vmem:[#allocation2 + $0x2] sm:$0x1] %v397_v2 }
  0x40   : > { %424 = vsyncadd [#allocation3], 16  ;;  %s1558_s11 = sld [smem:[#allocation5 + $0x3]] }
  0x46   : > { %s427_s16 = scalar_lea.vmem %s2053_s6, %s1558_s11 }
  0x47   : > { %v447_v3 = vld [vmem:[%s427_s16] sm:$0x1] }
  0x48   : > { %448 = vst [vmem:[#allocation2 + $0x3] sm:$0x1] %v447_v3 }
  0x49   : > { %474 = vsyncadd [#allocation3], 16  ;;  %s1559_s19 = sld [smem:[#allocation5 + $0x4]] }
  0x4f   : > { %s477_s23 = scalar_lea.vmem %s2053_s6, %s1559_s19 }
  0x50   : > { %v497_v4 = vld [vmem:[%s477_s23] sm:$0x1] }
  0x51   : > { %498 = vst [vmem:[#allocation2 + $0x4] sm:$0x1] %v497_v4 }
  0x52   : > { %524 = vsyncadd [#allocation3], 16  ;;  %s1560_s24 = sld [smem:[#allocation5 + $0x5]] }
  0x58   : > { %s527_s26 = scalar_lea.vmem %s2053_s6, %s1560_s24 }
  0x59   : > { %v547_v5 = vld [vmem:[%s527_s26] sm:$0x1] }
  0x5a   : > { %548 = vst [vmem:[#allocation2 + $0x5] sm:$0x1] %v547_v5 }
  0x5b   : > { %574 = vsyncadd [#allocation3], 16  ;;  %s1561_s11 = sld [smem:[#allocation5 + $0x6]] }
  0x61   : > { %s577_s16 = scalar_lea.vmem %s2053_s6, %s1561_s11 }
  0x62   : > { %v597_v6 = vld [vmem:[%s577_s16] sm:$0x1] }
  0x63   : > { %598 = vst [vmem:[#allocation2 + $0x6] sm:$0x1] %v597_v6 }
  0x64   : > { %624 = vsyncadd [#allocation3], 16  ;;  %s1562_s19 = sld [smem:[#allocation5 + $0x7]] }
  0x6a   : > { %s627_s23 = scalar_lea.vmem %s2053_s6, %s1562_s19 }
  0x6b   : > { %v647_v7 = vld [vmem:[%s627_s23] sm:$0x1] }
  0x6c   : > { %648 = vst [vmem:[#allocation2 + $0x7] sm:$0x1] %v647_v7 }
  0x6d   : > { %674 = vsyncadd [#allocation3], 16 }
  0x6e PF: > { %s675_s24 = sadd.s32 1, %s1766_s8 }
  0x6f   : > { %p1563_p4 = scmp.ge.s32.totalorder %s675_s24, 2 }
  0x70   : > { %s1606_s28 = sshll.u32 (!%p1563_p4), %s1766_s8, 7  ;;  %s2062_s11 = ssub.s32 (!%p1563_p4), 1, %s1884_s21 }
  0x71   : > { %679 = sbr.rel (%p1563_p4) target bundleno = 194 (0xc2), region = 288  ;;  %s1921_s25 = sadd.s32 (!%p1563_p4), 128, %s1606_s28 }
  0x72   : > { %s688_s26 = sld [smem:[#allocation5 + %s1921_s25]] (!%p1563_p4)  ;;  %s1564_s12 = sshll.u32 (!%p1563_p4), %s2062_s11, 3 }
  0x73   : > { %s1929_s13 = scalar_lea.vmem (!%p1563_p4), [#allocation2], %s1564_s12  ;;  %s2063_s22 = smov (!%p1563_p4), %s2062_s11 }
  0x74   : > { %s1934_s23 = scalar_lea.sflag (!%p1563_p4), [#allocation3], %s2063_s22 }
  0x78   : > { %s689_s19 = scalar_lea.vmem %s2053_s6, %s688_s26 }
  0x79   : > { %v710_v8 = vld [vmem:[%s689_s19] sm:$0x1] }
  0x7a   : > { %711 = vst [vmem:[%s1929_s13] sm:$0x1] %v710_v8 }
  0x7b   : > { %737 = vsyncadd %s1934_s23, 16  ;;  %s745_s24 = sadd.s32 1, %s1921_s25 }
  0x7c   : > { %s746_s28 = sld [smem:[#allocation5 + %s745_s24]] }
  0x82   : > { %s748_s14 = scalar_lea.vmem %s2053_s6, %s746_s28 }
  0x83   : > { %v768_v9 = vld [vmem:[%s748_s14] sm:$0x1] }
  0x84   : > { %1569 = vst [vmem:[%s1929_s13 + $0x1] sm:$0x1] %v768_v9 }
  0x85   : > { %795 = vsyncadd %s1934_s23, 16  ;;  %s803_s26 = sadd.s32 2, %s1921_s25 }
  0x86   : > { %s804_s12 = sld [smem:[#allocation5 + %s803_s26]] }
  0x8c   : > { %s806_s22 = scalar_lea.vmem %s2053_s6, %s804_s12 }
  0x8d   : > { %v826_v10 = vld [vmem:[%s806_s22] sm:$0x1] }
  0x8e   : > { %1573 = vst [vmem:[%s1929_s13 + $0x2] sm:$0x1] %v826_v10 }
  0x8f   : > { %853 = vsyncadd %s1934_s23, 16  ;;  %s861_s1 = sadd.s32 3, %s1921_s25 }
  0x90   : > { %s862_s24 = sld [smem:[#allocation5 + %s861_s1]] }
  0x96   : > { %s864_s14 = scalar_lea.vmem %s2053_s6, %s862_s24 }
  0x97   : > { %v884_v11 = vld [vmem:[%s864_s14] sm:$0x1] }
  0x98   : > { %1577 = vst [vmem:[%s1929_s13 + $0x3] sm:$0x1] %v884_v11 }
  0x99   : > { %911 = vsyncadd %s1934_s23, 16  ;;  %s919_s26 = sadd.s32 4, %s1921_s25 }
  0x9a   : > { %s920_s12 = sld [smem:[#allocation5 + %s919_s26]] }
  0xa0   : > { %s922_s22 = scalar_lea.vmem %s2053_s6, %s920_s12 }
  0xa1   : > { %v942_v12 = vld [vmem:[%s922_s22] sm:$0x1] }
  0xa2   : > { %1581 = vst [vmem:[%s1929_s13 + $0x4] sm:$0x1] %v942_v12 }
  0xa3   : > { %969 = vsyncadd %s1934_s23, 16  ;;  %s977_s1 = sadd.s32 5, %s1921_s25 }
  0xa4   : > { %s978_s24 = sld [smem:[#allocation5 + %s977_s1]] }
  0xaa   : > { %s980_s14 = scalar_lea.vmem %s2053_s6, %s978_s24 }
  0xab   : > { %v1000_v13 = vld [vmem:[%s980_s14] sm:$0x1] }
  0xac   : > { %1585 = vst [vmem:[%s1929_s13 + $0x5] sm:$0x1] %v1000_v13 }
  0xad   : > { %1027 = vsyncadd %s1934_s23, 16  ;;  %s1035_s26 = sadd.s32 6, %s1921_s25 }
  0xae   : > { %s1036_s12 = sld [smem:[#allocation5 + %s1035_s26]] }
  0xb4   : > { %s1038_s22 = scalar_lea.vmem %s2053_s6, %s1036_s12 }
  0xb5   : > { %v1058_v14 = vld [vmem:[%s1038_s22] sm:$0x1] }
  0xb6   : > { %1589 = vst [vmem:[%s1929_s13 + $0x6] sm:$0x1] %v1058_v14 }
  0xb7   : > { %1085 = vsyncadd %s1934_s23, 16  ;;  %s1093_s1 = sadd.s32 7, %s1921_s25 }
  0xb8   : > { %s1094_s24 = sld [smem:[#allocation5 + %s1093_s1]] }
  0xbe   : > { %s1096_s14 = scalar_lea.vmem %s2053_s6, %s1094_s24 }
  0xbf   : > { %v1116_v15 = vld [vmem:[%s1096_s14] sm:$0x1] }
  0xc0   : > { %1593 = vst [vmem:[%s1929_s13 + $0x7] sm:$0x1] %v1116_v15 }
  0xc1   : > { %1143 = vsyncadd %s1934_s23, 16 }
  0xc2 PF: > { %v1144_v16 = vld [vmem:[%s1891_s27] sm:$0xff]  ;;  %v1777_v17 = vmov 0   ;;  %s1597_s25 = sshll.u32 %s1884_s21, 3  ;;  %s1177_s1 = scalar_lea.sflag [#allocation3], %s1884_s21 }
  0xc3   : > { %1679 = vset.pattern.permute.xlu0 %v1777_v17  ;;  %vm1147_vm0 = vcmp.eq.s32.totalorder %v1144_v16, 1  ;;  %vm1145_vm1 = vcmp.eq.s32.totalorder %v1144_v16, 0  ;;  %v1594_v21 = vld [vmem:[%s2050_s3 + $0x1] ss:$0 sm:$0xff]  ;;  %v1595_v22 = vld [vmem:[%s2050_s3 + $0x2] ss:$0 sm:$0xff] }
  0xc4   : > { %v1150_v18 = vsel %vm1147_vm0, 1, %v1777_v17  ;;  %v1164_v19 = vsel %vm1145_vm1, 1, %v1777_v17  ;;  %v1596_v23 = vld [vmem:[%s2050_s3] ss:$0 sm:$0xff] }
  0xc5   : > { %1152 = vperm.xlu0 %1679, %v1150_v18   ;;  %v1174_v24 = vld [vmem:[%s2049_s2] sm:$0xff] }
  0xc9   : > { %1166 = vperm.xlu0 %1679, %v1164_v19  }
 0x140   : > { %v1153_v20 = vpop.permute.xlu0 %1152 }
 0x141   : > { %vm1154_vm2 = vcmp.eq.s32.totalorder %v1153_v20, 1 }
 0x142   : > { %v1163_v26 = vsel %vm1154_vm2, %v1594_v21, %v1595_v22 }
 0x144   : > { %v1167_v25 = vpop.permute.xlu0 %1166 }
 0x145   : > { %vm1168_vm3 = vcmp.eq.s32.totalorder %v1167_v25, 1 }
 0x146   : > { %v1173_v27 = vsel %vm1168_vm3, %v1596_v23, %v1163_v26 }
 0x147   : > { %v1175_v28 = vadd.f32 %v1174_v24, %v1173_v27 }
 0x148   : > { %1746 = dma.done.wait %s1177_s1, 128 }
 0x149   : > { %1747 = vsyncadd %s1177_s1, 4294967168  ;;  %s1181_s24 = scalar_lea.vmem [#allocation2], %s1597_s25  ;;  %vm1184_vm4 = vcmask 261120   ;;  %v1598_v41 = vld [vmem:[%s2051_s4] ss:$0 sm:$0xff]  ;;  %s1601_s25 = sshll.u32 %s1766_s8, 7 }
 0x14a   : > { %v1182_v29 = vld [vmem:[%s1181_s24] sm:$0xff]  ;;  %s2064_s26 = scalar_lea.vmem [#allocation6], %s1881_s20  ;;  %s1229_s27 = scalar_lea.hbm %s2054_s7, %s1601_s25 }
 0x14b   : > { %v1183_v30 = vadd.f32 %v1182_v29, %v1175_v28  ;;  %v1599_v43 = vld [vmem:[%s2052_s5] ss:$0 sm:$0xff]  ;;  %s1231_s12 = sshll.u32 %s2064_s26, 4  ;;  %s2065_s16 = smov %s2064_s26  ;;  %s1232_s12 = int_to_ptr.vmem [resolvable:$true] %s1231_s12 }
 0x14c   : > { %s2066_s19 = sand.u32 1, %s1758_s30   ;;  %s1694_s1 = scalar_lea.vmem %s1232_s12, 128 }
 0x14d   : > { %v1185_v31 = vsel %vm1184_vm4, %v1183_v30, 0.0  ;;  %s1217_s22 = scalar_lea.sflag [#allocation7], %s2066_s19  ;;  %p1695_p5 = scmp.ne.s32.totalorder %s1232_s12, %s1694_s1 }
 0x14e   : > { %1186 = vadd.xlane.f32.xlu0 %v1185_v31  ;;  %s1778_s8 = smov [#allocation6]  }
 0x14f   : > { %p1696_p6 = pnand %p1695_p5, %p1862_p9  ;;  %s1698_s24 = sshll.u32 %s1778_s8, 4  ;;  %s1699_s24 = int_to_ptr.vmem [resolvable:$false] %s1698_s24 }
 0x150   : > { %s1700_s21 = scalar_lea.vmem %s1699_s24, 256  ;;  %p1701_p8 = scmp.lt.s32.totalorder %s1232_s12, %s1699_s24 }
 0x151   : > { %p1697_p7 = pneg %p1696_p6  ;;  %p1702_p10 = scmp.lt.s32.totalorder %s1700_s21, %s1694_s1 }
 0x153   : > { %p1703_p11 = por %p1702_p10, %p1701_p8 }
 0x155   : > { %p1704_p12 = pnand %p1703_p11, %p1697_p7 }
 0x1d7   : > { %v1187_v32 = vpop.xlane.xlu0 %1186 }
 0x1d8   : > { %v1189_v33 = vmul.f32 0.03125, %v1187_v32 }
 0x1da   : > { %v1190_v34 = vsub.f32 %v1183_v30, %v1189_v33 }
 0x1dc   : > { %v1191_v35 = vmul.f32 %v1190_v34, %v1190_v34 }
 0x1de   : > { %v1192_v36 = vsel %vm1184_vm4, %v1191_v35, 0.0 }
 0x1df   : > { %1193 = vadd.xlane.f32.xlu0 %v1192_v36 }
 0x268   : > { %v1194_v37 = vpop.xlane.xlu0 %1193 }
 0x269   : > { %v1195_v38 = vmul.f32 0.03125, %v1194_v37 }
 0x26b   : > { %v1196_v39 = vadd.f32 1e-06, %v1195_v38 }
 0x26d   : > { %1680 = vrsqrt.f32 %v1196_v39 }
 0x27a   : > { %v1681_v40 = vpop.eup %1680 }
 0x27b   : > { %v1198_v42 = vmul.f32 %v1681_v40, %v1190_v34 }
 0x27d   : > { %v1206_v44 = vmul.f32 %v1598_v41, %v1198_v42 }
 0x27f   : > { %v1214_v45 = vadd.f32 %v1599_v43, %v1206_v44 }
 0x281   : > { %1215 = vst.msk [vmem:[%s2065_s16] sm:$0xff] %vm1184_vm4, %v1214_v45 }
 0x282   : > { %1707 = shalt.err (!%p1704_p12)
}
 0x283   : > { %s1708_s28 = scalar_lea.hbm %s1229_s27, 128  ;;  %s1712_s14 = scalar_lea.hbm %s2054_s7, 256 }
 0x284   : > { %p1709_p0 = scmp.ne.s32.totalorder %s1229_s27, %s1708_s28  ;;  %p1713_p3 = scmp.lt.s32.totalorder %s1229_s27, %s2054_s7 }
 0x285   : > { %p1714_p4 = scmp.lt.s32.totalorder %s1712_s14, %s1708_s28 }
 0x286   : > { %p1710_p1 = pnand %p1709_p0, %p1862_p9 }
 0x287   : > { %p1715_p5 = por %p1714_p4, %p1713_p3 }
 0x288   : > { %p1711_p2 = pneg %p1710_p1 }
 0x28a   : > { %p1716_p6 = pnand %p1715_p5, %p1711_p2 }
 0x28c   : > { %1719 = shalt.err (!%p1716_p6)
}
 0x28d   : > { %1622 = dma.vmem_to_hbm [thread:$0]  (%p1862_p9), %s1232_s12, 128, %s1229_s27, %s1217_s22  }
 0x28e PF: > { %p1628_p7 = scmp.ge.s32.totalorder %s1774_s10, 2  ;;  %s1243_s13 = sand.u32 1, %s1754_s29  }
 0x28f   : > { %s1244_s23 = scalar_lea.sflag [#allocation7], %s1243_s13 }
 0x290   : > { %p1625_p8 = pnand %p1628_p7, %p1869_p13 }
 0x292   : > { %p1626_p10 = pneg %p1625_p8 }
 0x294   : > { %1749 = dma.done.wait (%p1626_p10), %s1244_s23, 128  }
 0x295   : > { %1751 = vsyncadd (%p1626_p10), %s1244_s23, 4294967168  ;;  %s26_s10 = sadd.s32 1, %s1774_s10   ;;  %s2067_s15 = sld [smem:[#allocation27_spill]] }
 0x296   : > { %p23_p11 = scmp.ge.s32.totalorder %s26_s10, 4   ;;  %s2068_s29 = smov %s1758_s30 }
 0x297   : > { %s2069_s30 = smov %s1762_s0  ;;  %s2070_s0 = smov %s1875_s18 }
 0x298   : > { %s2071_s8 = smov %s1770_s9  ;;  %25 = sbr.rel (!%p23_p11) target bundleno = 19 (0x13), region = 761 }
 0x29b   : > { %s2072_s9 = smov %s2067_s15 }
 0x29d   :  { %1249 = vsyncpa [#allocation7], 1 }
 0x29e   :  { %1251 = vsyncpa [#allocation7 + $0x1], 1 }
 0x29f   :  { %1252 = vsyncmov [#allocation3] }
 0x2a2   :  { %s1253_s17 = vpop.sfrf %1252 }
 0x2a3   :  { %p1604_p9 = scmp.ne.s32.totalorder %s1253_s17, 0 }
 0x2a5   :  { %1257 = shalt.err (%p1604_p9)  }
 0x2a6   :  { %1259 = vsyncmov [#allocation3 + $0x1] }
 0x2a9   :  { %s1260_s12 = vpop.sfrf %1259 }
 0x2aa   :  { %p1605_p13 = scmp.ne.s32.totalorder %s1260_s12, 0 }
 0x2ac   :  { %1264 = shalt.err (%p1605_p13)  }

</bundles_post_ra>
